<compile_context>
chip_gen: v7x
topology: tpu7x:2x2x1
jax: 0.10.0
libtpu: 0.0.40
codegen_flags: <defaults>
</compile_context>

<pallas_src>
import functools

import jax
import jax.numpy as jnp
from jax import lax
from jax.experimental import pallas as pl
from jax.experimental.pallas import tpu as pltpu


_NEG_LARGE = -1.0e30  # "effectively -inf", finite so exp/max never produce NaN


def _round_up(x, m):
    return ((x + m - 1) // m) * m


def _ce_label_smooth_kernel(
    logits_ref,     # (TILE_B, TILE_C) VMEM block of logits
    labels_ref,     # (TILE_B, 1)      VMEM block of int32 labels
    out_ref,        # (1, 8, 128)      VMEM per-core partial (broadcast scalar)
    m_ref,          # (TILE_B, 1) VMEM running row max
    s_ref,          # (TILE_B, 1) VMEM running sum(exp(x - m))
    w_ref,          # (TILE_B, 1) VMEM running sum_c w_c * x_c
    *,
    epsilon,
    num_classes,
    batch_size,
    tile_b,
    tile_c,
    tiles_per_core,
    num_c_tiles,
    mask_rows,
    mask_cols,
):
    c = pl.program_id(0)
    i = pl.program_id(1)
    j = pl.program_id(2)

    # Zero this core's partial on its first grid step.
    @pl.when((i == 0) & (j == 0))
    def _():
        out_ref[...] = jnp.zeros_like(out_ref)

    # Reset running row statistics at the first class tile of every batch tile.
    @pl.when(j == 0)
    def _():
        m_ref[...] = jnp.full_like(m_ref, _NEG_LARGE)
        s_ref[...] = jnp.zeros_like(s_ref)
        w_ref[...] = jnp.zeros_like(w_ref)

    x = logits_ref[...].astype(jnp.float32)             # (TILE_B, TILE_C)
    labels = labels_ref[...]                             # (TILE_B, 1) int32

    t = c * tiles_per_core + i                            # logical batch-tile idx
    cls = j * tile_c + lax.broadcasted_iota(jnp.int32, x.shape, 1)

    # Validity mask for padded rows / padded class columns (trace-time gated).
    valid = None
    if mask_rows:
        rows = t * tile_b + lax.broadcasted_iota(jnp.int32, x.shape, 0)
        valid = rows < batch_size
    if mask_cols:
        cm = cls < num_classes
        valid = cm if valid is None else (valid & cm)
    if valid is not None:
        x = jnp.where(valid, x, _NEG_LARGE)               # keep exp/max finite

    # Fused smoothed-target weights: w_c = eps/C + (1-eps)*[c == label].
    w_hit = jnp.float32(1.0 - epsilon + epsilon / num_classes)
    w_miss = jnp.float32(epsilon / num_classes)
    w = jnp.where(cls == labels, w_hit, w_miss)
    if valid is not None:
        w = jnp.where(valid, w, jnp.float32(0.0))

    # Online logsumexp across class tiles.
    m_tile = jnp.max(x, axis=-1, keepdims=True)
    m_new = jnp.maximum(m_ref[...], m_tile)
    alpha = jnp.exp(m_ref[...] - m_new)
    s_ref[...] = alpha * s_ref[...] + jnp.sum(jnp.exp(x - m_new), axis=-1, keepdims=True)
    m_ref[...] = m_new
    w_ref[...] = w_ref[...] + jnp.sum(w * x, axis=-1, keepdims=True)

    # Finalize this batch tile once all class tiles have been folded in.
    @pl.when(j == num_c_tiles - 1)
    def _():
        loss_row = m_ref[...] + jnp.log(s_ref[...]) - w_ref[...]   # (TILE_B, 1)
        if mask_rows:
            rows1 = t * tile_b + lax.broadcasted_iota(jnp.int32, loss_row.shape, 0)
            loss_row = jnp.where(rows1 < batch_size, loss_row, jnp.float32(0.0))
        out_ref[...] += jnp.sum(loss_row)                  # broadcast into block


def cross_entropy_label_smooth(logits, labels, epsilon=0.1,
                               tile_b=None, tile_c=None, num_cores=None):
    """logits: (B, C) f32/bf16; labels: (B,) int. Returns scalar f32 loss."""
    B, C = logits.shape
    labels2d = labels.astype(jnp.int32).reshape(B, 1)
    itemsize = jnp.dtype(logits.dtype).itemsize
    align = 16 if itemsize == 2 else 8              # bf16 packs 16 sublanes

    # ---- class tiling: full C if modest, else 2048-wide lane-aligned tiles ----
    if tile_c is None:
        tile_c = C if C <= 4096 else 2048           # 2048 is a multiple of 128
    tile_c = min(tile_c, C)
    num_c_tiles = pl.cdiv(C, tile_c)
    mask_cols = (C % tile_c) != 0

    # ---- VMEM budget (v7x has only 64 MiB physical per core) ----
    try:
        vmem_cap = int(pltpu.get_tpu_info().vmem_capacity_bytes)
    except Exception:
        vmem_cap = 64 * 1024 * 1024                 # conservative fallback
    budget = int(vmem_cap * 0.40)

    # ---- batch tile: stream >= ~2 MiB per step, bounded by the VMEM budget ----
    if tile_b is None:
        target_bytes = 2 * 1024 * 1024
        tb = _round_up(pl.cdiv(target_bytes, tile_c * itemsize), align)
        # Live bytes per row: 2x double-buffered input block + ~6 f32
        # intermediates (cast, exp, iota, weights, products) + lane-padded
        # (.,1) labels/scratch buffers.
        per_row = tile_c * (2 * itemsize + 6 * 4) + 5 * 128 * 4
        tb_vmem = max(align, (budget // per_row) // align * align)
        tile_b = min(tb, tb_vmem, _round_up(B, align))
    if tile_b >= B:
        tile_b = B                                  # single full-batch tile
    n_b_blocks = pl.cdiv(B, tile_b)

    # ---- megacore split (v7x): each core reduces its own chunk of tiles ----
    if num_cores is None:
        num_cores = 2 if n_b_blocks >= 2 else 1
    tiles_per_core = pl.cdiv(n_b_blocks, num_cores)
    mask_rows = (num_cores * tiles_per_core * tile_b) > B
    need_clamp = (num_cores * tiles_per_core) > n_b_blocks
    last_blk = n_b_blocks - 1

    if need_clamp:
        # Out-of-range tiles (core overshoot) re-read the last valid block;
        # their rows are fully masked (logical row id >= B), so they add 0.
        def logits_map(c, i, j):
            return (jnp.minimum(c * tiles_per_core + i, last_blk), j)

        def labels_map(c, i, j):
            return (jnp.minimum(c * tiles_per_core + i, last_blk), 0)
    else:
        def logits_map(c, i, j):
            return (c * tiles_per_core + i, j)

        def labels_map(c, i, j):
            return (c * tiles_per_core + i, 0)

    kernel = functools.partial(
        _ce_label_smooth_kernel,
        epsilon=float(epsilon),
        num_classes=C,
        batch_size=B,
        tile_b=tile_b,
        tile_c=tile_c,
        tiles_per_core=tiles_per_core,
        num_c_tiles=num_c_tiles,
        mask_rows=mask_rows,
        mask_cols=mask_cols,
    )

    # Scoped-VMEM limit sized for the live working set (with headroom).
    work = (2 * tile_b * tile_c * itemsize          # double-buffered logits
            + 6 * tile_b * tile_c * 4               # f32 intermediates
            + 5 * tile_b * 128 * 4)                 # labels + (.,1) scratch
    vmem_limit = int(min(vmem_cap * 9 // 10, max(work + (16 << 20), 32 << 20)))

    partials = pl.pallas_call(
        kernel,
        out_shape=jax.ShapeDtypeStruct((num_cores, 8, 128), jnp.float32),
        grid=(num_cores, tiles_per_core, num_c_tiles),
        in_specs=[
            pl.BlockSpec((tile_b, tile_c), logits_map),
            # Labels block index only depends on the batch tile, so its tiny
            # DMA is issued once per batch tile, not once per grid step.
            pl.BlockSpec((tile_b, 1), labels_map),
        ],
        # One (8,128) block per core, revisited across i/j (accumulator).
        out_specs=pl.BlockSpec((1, 8, 128), lambda c, i, j: (c, 0, 0)),
        scratch_shapes=[
            pltpu.VMEM((tile_b, 1), jnp.float32),   # running max
            pltpu.VMEM((tile_b, 1), jnp.float32),   # running sum(exp)
            pltpu.VMEM((tile_b, 1), jnp.float32),   # running weighted sum
        ],
        compiler_params=pltpu.CompilerParams(
            dimension_semantics=("parallel", "arbitrary", "arbitrary"),
            vmem_limit_bytes=vmem_limit,
        ),
    )(logits, labels2d)

    # (-targets * log_probs).mean(0).sum() == (1/B) * sum_rows loss_row
    return jnp.sum(partials[:, 0, 0]) / jnp.float32(B)


def _reference(logits, labels, epsilon=0.1):
    """Pure-JAX reference mirroring the PyTorch forward."""
    B, C = logits.shape
    log_probs = jax.nn.log_softmax(logits.astype(jnp.float32), axis=1)
    onehot = jax.nn.one_hot(labels, C, dtype=jnp.float32)
    targets = (1.0 - epsilon) * onehot + epsilon / C
    return jnp.sum(jnp.mean(-targets * log_probs, axis=0))


if __name__ == "__main__":
    root = jax.random.PRNGKey(0)

    cases = [
        # (name, B, C, dtype, kwargs)
        ("auto-tiled f32", 12, 40, jnp.float32, {}),
        ("2-core batch split + padded last tile", 12, 40, jnp.float32,
         dict(tile_b=8, num_cores=2)),
        ("class-tiled online LSE + tail mask + core clamp", 24, 300, jnp.float32,
         dict(tile_b=8, tile_c=128, num_cores=2)),
        ("bf16 logits", 16, 256, jnp.bfloat16, {}),
    ]

    for idx, (name, B, C, dtype, kw) in enumerate(cases):
        k_logits, k_labels = jax.random.split(jax.random.fold_in(root, idx))
        logits = jax.random.normal(k_logits, (B, C), dtype=jnp.float32).astype(dtype)
        labels = jax.random.randint(k_labels, (B,), 0, C, dtype=jnp.int32)

        loss = jax.block_until_ready(
            cross_entropy_label_smooth(logits, labels, epsilon=0.1, **kw))
        ref = jax.block_until_ready(_reference(logits, labels, epsilon=0.1))
        assert jnp.allclose(loss, ref, atol=1e-4, rtol=1e-4), (name, loss, ref)

    print("KERNEL_OK")
</pallas_src>

<mosaic_0001>
module attributes {stable_mosaic.version = 11 : i64} {
  func.func @_ce_label_smooth_kernel(%arg0: i32, %arg1: i32, %arg2: i32, %arg3: memref<12x40xf32, #tpu.memory_space<vmem>>, %arg4: memref<12x1xi32, #tpu.memory_space<vmem>>, %arg5: memref<1x8x128xf32, #tpu.memory_space<vmem>>, %arg6: memref<12x1xf32, #tpu.memory_space<vmem>>, %arg7: memref<12x1xf32, #tpu.memory_space<vmem>>, %arg8: memref<12x1xf32, #tpu.memory_space<vmem>>) attributes {dimension_semantics = [#tpu.dimension_semantics<parallel>, #tpu.dimension_semantics<arbitrary>, #tpu.dimension_semantics<arbitrary>], iteration_bounds = array<i64: 1, 1, 1>, scalar_prefetch = 0 : i64, scratch_operands = 3 : i64, tpu.core_type = #tpu.core_type<tc>, window_params = [{transform_indices = @transform_0, window_bounds = array<i64: 12, 40>}, {transform_indices = @transform_1, window_bounds = array<i64: 12, 1>}, {transform_indices = @transform_2, window_bounds = array<i64: 1, 8, 128>}]} {
    %c0_i32 = arith.constant 0 : i32
    %0 = arith.cmpi eq, %arg1, %c0_i32 : i32
    %c0_i32_0 = arith.constant 0 : i32
    %1 = arith.cmpi eq, %arg2, %c0_i32_0 : i32
    %2 = arith.andi %0, %1 : i1
    %3 = arith.extui %2 : i1 to i32
    %c0_i32_1 = arith.constant 0 : i32
    %4 = arith.cmpi ne, %3, %c0_i32_1 : i32
    scf.if %4 {
      %cst_27 = arith.constant 0.000000e+00 : f32
      %45 = vector.broadcast %cst_27 : f32 to vector<1x8x128xf32>
      %c0_28 = arith.constant 0 : index
      %c0_29 = arith.constant 0 : index
      %c0_30 = arith.constant 0 : index
      %46 = vector.load %arg5[%c0_28, %c0_29, %c0_30] : memref<1x8x128xf32, #tpu.memory_space<vmem>>, vector<1x8x128xf32>
      tpu.vector_store %arg5[%c0_28, %c0_29, %c0_30], %45 {strides = array<i32>} : memref<1x8x128xf32, #tpu.memory_space<vmem>>, vector<1x8x128xf32>,
    } else {
    }
    %c0_i32_2 = arith.constant 0 : i32
    %5 = arith.cmpi eq, %arg2, %c0_i32_2 : i32
    %6 = arith.extui %5 : i1 to i32
    %c0_i32_3 = arith.constant 0 : i32
    %7 = arith.cmpi ne, %6, %c0_i32_3 : i32
    scf.if %7 {
      %cst_27 = arith.constant -1.000000e+30 : f32
      %45 = vector.broadcast %cst_27 : f32 to vector<12x1xf32>
      %c0_28 = arith.constant 0 : index
      %c0_29 = arith.constant 0 : index
      %46 = vector.load %arg6[%c0_28, %c0_29] : memref<12x1xf32, #tpu.memory_space<vmem>>, vector<12x1xf32>
      tpu.vector_store %arg6[%c0_28, %c0_29], %45 {strides = array<i32>} : memref<12x1xf32, #tpu.memory_space<vmem>>, vector<12x1xf32>,
      %cst_30 = arith.constant 0.000000e+00 : f32
      %47 = vector.broadcast %cst_30 : f32 to vector<12x1xf32>
      %c0_31 = arith.constant 0 : index
      %c0_32 = arith.constant 0 : index
      %48 = vector.load %arg7[%c0_31, %c0_32] : memref<12x1xf32, #tpu.memory_space<vmem>>, vector<12x1xf32>
      tpu.vector_store %arg7[%c0_31, %c0_32], %47 {strides = array<i32>} : memref<12x1xf32, #tpu.memory_space<vmem>>, vector<12x1xf32>,
      %cst_33 = arith.constant 0.000000e+00 : f32
      %49 = vector.broadcast %cst_33 : f32 to vector<12x1xf32>
      %c0_34 = arith.constant 0 : index
      %c0_35 = arith.constant 0 : index
      %50 = vector.load %arg8[%c0_34, %c0_35] : memref<12x1xf32, #tpu.memory_space<vmem>>, vector<12x1xf32>
      tpu.vector_store %arg8[%c0_34, %c0_35], %49 {strides = array<i32>} : memref<12x1xf32, #tpu.memory_space<vmem>>, vector<12x1xf32>,
    } else {
    }
    %c0 = arith.constant 0 : index
    %c0_4 = arith.constant 0 : index
    %8 = vector.load %arg3[%c0, %c0_4] : memref<12x40xf32, #tpu.memory_space<vmem>>, vector<12x40xf32>
    %c0_5 = arith.constant 0 : index
    %c0_6 = arith.constant 0 : index
    %9 = vector.load %arg4[%c0_5, %c0_6] : memref<12x1xi32, #tpu.memory_space<vmem>>, vector<12x1xi32>
    %c40_i32 = arith.constant 40 : i32
    %10 = arith.muli %arg2, %c40_i32 : i32
    %11 = tpu.iota {dimensions = array<i32: 1>} : vector<12x40xi32>
    %12 = vector.broadcast %10 : i32 to vector<12x40xi32>
    %13 = arith.addi %12, %11 : vector<12x40xi32>
    %14 = vector.broadcast %9 : vector<12x1xi32> to vector<12x40xi32>
    %15 = arith.cmpi eq, %13, %14 : vector<12x40xi32>
    %cst = arith.constant 0.902499973 : f32
    %cst_7 = arith.constant 2.500000e-03 : f32
    %16 = vector.broadcast %cst : f32 to vector<12x40xf32>
    %17 = vector.broadcast %cst_7 : f32 to vector<12x40xf32>
    %18 = arith.select %15, %16, %17 : vector<12x40xi1>, vector<12x40xf32>
    %cst_8 = arith.constant dense<0xFF800000> : vector<12xf32>
    %19 = vector.multi_reduction <maximumf>, %8, %cst_8 [1] : vector<12x40xf32> to vector<12xf32>
    %20 = vector.shape_cast %19 : vector<12xf32> to vector<12x1xf32>
    %c0_9 = arith.constant 0 : index
    %c0_10 = arith.constant 0 : index
    %21 = vector.load %arg6[%c0_9, %c0_10] : memref<12x1xf32, #tpu.memory_space<vmem>>, vector<12x1xf32>
    %22 = arith.maximumf %21, %20 : vector<12x1xf32>
    %c0_11 = arith.constant 0 : index
    %c0_12 = arith.constant 0 : index
    %23 = vector.load %arg6[%c0_11, %c0_12] : memref<12x1xf32, #tpu.memory_space<vmem>>, vector<12x1xf32>
    %24 = arith.subf %23, %22 : vector<12x1xf32>
    %25 = math.exp %24 : vector<12x1xf32>
    %c0_13 = arith.constant 0 : index
    %c0_14 = arith.constant 0 : index
    %26 = vector.load %arg7[%c0_13, %c0_14] : memref<12x1xf32, #tpu.memory_space<vmem>>, vector<12x1xf32>
    %27 = arith.mulf %25, %26 : vector<12x1xf32>
    %28 = vector.broadcast %22 : vector<12x1xf32> to vector<12x40xf32>
    %29 = arith.subf %8, %28 : vector<12x40xf32>
    %30 = math.exp %29 : vector<12x40xf32>
    %cst_15 = arith.constant dense<0.000000e+00> : vector<12xf32>
    %31 = vector.multi_reduction <add>, %30, %cst_15 [1] : vector<12x40xf32> to vector<12xf32>
    %32 = vector.shape_cast %31 : vector<12xf32> to vector<12x1xf32>
    %33 = arith.addf %27, %32 : vector<12x1xf32>
    %c0_16 = arith.constant 0 : index
    %c0_17 = arith.constant 0 : index
    %34 = vector.load %arg7[%c0_16, %c0_17] : memref<12x1xf32, #tpu.memory_space<vmem>>, vector<12x1xf32>
    tpu.vector_store %arg7[%c0_16, %c0_17], %33 {strides = array<i32>} : memref<12x1xf32, #tpu.memory_space<vmem>>, vector<12x1xf32>,
    %c0_18 = arith.constant 0 : index
    %c0_19 = arith.constant 0 : index
    %35 = vector.load %arg6[%c0_18, %c0_19] : memref<12x1xf32, #tpu.memory_space<vmem>>, vector<12x1xf32>
    tpu.vector_store %arg6[%c0_18, %c0_19], %22 {strides = array<i32>} : memref<12x1xf32, #tpu.memory_space<vmem>>, vector<12x1xf32>,
    %c0_20 = arith.constant 0 : index
    %c0_21 = arith.constant 0 : index
    %36 = vector.load %arg8[%c0_20, %c0_21] : memref<12x1xf32, #tpu.memory_space<vmem>>, vector<12x1xf32>
    %37 = arith.mulf %18, %8 : vector<12x40xf32>
    %cst_22 = arith.constant dense<0.000000e+00> : vector<12xf32>
    %38 = vector.multi_reduction <add>, %37, %cst_22 [1] : vector<12x40xf32> to vector<12xf32>
    %39 = vector.shape_cast %38 : vector<12xf32> to vector<12x1xf32>
    %40 = arith.addf %36, %39 : vector<12x1xf32>
    %c0_23 = arith.constant 0 : index
    %c0_24 = arith.constant 0 : index
    %41 = vector.load %arg8[%c0_23, %c0_24] : memref<12x1xf32, #tpu.memory_space<vmem>>, vector<12x1xf32>
    tpu.vector_store %arg8[%c0_23, %c0_24], %40 {strides = array<i32>} : memref<12x1xf32, #tpu.memory_space<vmem>>, vector<12x1xf32>,
    %c0_i32_25 = arith.constant 0 : i32
    %42 = arith.cmpi eq, %arg2, %c0_i32_25 : i32
    %43 = arith.extui %42 : i1 to i32
    %c0_i32_26 = arith.constant 0 : i32
    %44 = arith.cmpi ne, %43, %c0_i32_26 : i32
    scf.if %44 {
      %c0_27 = arith.constant 0 : index
      %c0_28 = arith.constant 0 : index
      %45 = vector.load %arg6[%c0_27, %c0_28] : memref<12x1xf32, #tpu.memory_space<vmem>>, vector<12x1xf32>
      %c0_29 = arith.constant 0 : index
      %c0_30 = arith.constant 0 : index
      %46 = vector.load %arg7[%c0_29, %c0_30] : memref<12x1xf32, #tpu.memory_space<vmem>>, vector<12x1xf32>
      %47 = math.log %46 : vector<12x1xf32>
      %48 = arith.addf %45, %47 : vector<12x1xf32>
      %c0_31 = arith.constant 0 : index
      %c0_32 = arith.constant 0 : index
      %49 = vector.load %arg8[%c0_31, %c0_32] : memref<12x1xf32, #tpu.memory_space<vmem>>, vector<12x1xf32>
      %50 = arith.subf %48, %49 : vector<12x1xf32>
      %c0_33 = arith.constant 0 : index
      %c0_34 = arith.constant 0 : index
      %c0_35 = arith.constant 0 : index
      %51 = vector.load %arg5[%c0_33, %c0_34, %c0_35] : memref<1x8x128xf32, #tpu.memory_space<vmem>>, vector<1x8x128xf32>
      %52 = vector.shape_cast %50 : vector<12x1xf32> to vector<1x12x1xf32>
      %cst_36 = arith.constant dense<0.000000e+00> : vector<1xf32>
      %53 = vector.multi_reduction <add>, %52, %cst_36 [1, 2] : vector<1x12x1xf32> to vector<1xf32>
      %54 = vector.shape_cast %53 : vector<1xf32> to vector<1x1x1xf32>
      %55 = vector.extract %54[0, 0, 0] : f32 from vector<1x1x1xf32>
      %56 = vector.broadcast %55 : f32 to vector<1x8x128xf32>
      %57 = arith.addf %51, %56 : vector<1x8x128xf32>
      %c0_37 = arith.constant 0 : index
      %c0_38 = arith.constant 0 : index
      %c0_39 = arith.constant 0 : index
      %58 = vector.load %arg5[%c0_37, %c0_38, %c0_39] : memref<1x8x128xf32, #tpu.memory_space<vmem>>, vector<1x8x128xf32>
      tpu.vector_store %arg5[%c0_37, %c0_38, %c0_39], %57 {strides = array<i32>} : memref<1x8x128xf32, #tpu.memory_space<vmem>>, vector<1x8x128xf32>,
    } else {
    }
    return
  }
  func.func @transform_0(%arg0: i32, %arg1: i32, %arg2: i32) -> (i32, i32) {
    %c1_i32 = arith.constant 1 : i32
    %0 = arith.muli %arg0, %c1_i32 : i32
    %1 = arith.addi %0, %arg1 : i32
    %c0_i32 = arith.constant 0 : i32
    return %1, %arg2 : i32, i32
  }
  func.func @transform_1(%arg0: i32, %arg1: i32, %arg2: i32) -> (i32, i32) {
    %c1_i32 = arith.constant 1 : i32
    %0 = arith.muli %arg0, %c1_i32 : i32
    %1 = arith.addi %0, %arg1 : i32
    %c0_i32 = arith.constant 0 : i32
    %c0_i32_0 = arith.constant 0 : i32
    return %1, %c0_i32 : i32, i32
  }
  func.func @transform_2(%arg0: i32, %arg1: i32, %arg2: i32) -> (i32, i32, i32) {
    %c0_i32 = arith.constant 0 : i32
    %c0_i32_0 = arith.constant 0 : i32
    %c0_i32_1 = arith.constant 0 : i32
    return %arg0, %c0_i32, %c0_i32_0 : i32, i32, i32
  }
}

</mosaic_0001>

<bundles_post_ra>
// kernel: tpu_custom_call.1
= control target key start
LH: loop header
LB: loop body
LE: loop exit
PB: predicated region body
PF: predicated region fallthrough
CT: control target
= control target key end

     0   :  { %vm93_vm0 = vcmask 326656   ;;  %vm97_vm1 = vcmask 322560   ;;  %s327_s0 = inlined_call_operand.vmem [shape: f32[12,40], index: 0, kind: input, shape index: {}]   ;;  %s328_s1 = inlined_call_operand.vmem [shape: s32[12,1], index: 1, kind: input, shape index: {}]   ;;  %s329_s2 = inlined_call_operand.hbm [shape: f32[1,8,128], index: 2, kind: output, shape index: {}]  }
   0x1   :  { %v74_v0 = vld [vmem:[%s327_s0] sm:$0xff]  ;;  %v75_v1 = vld [vmem:[%s327_s0 + $0x8] sm:$0xf] }
   0x2   :  { %v94_v2 = vsel %vm93_vm0, %v74_v0, -inf }
   0x3   :  { %7 = vsyncpa [#allocation6], 0  ;;  %95 = vmax.xlane.f32.xlu0 %v94_v2  ;;  %v98_v3 = vsel %vm97_vm1, %v75_v1, -inf  ;;  %vm66_vm2 = vcmask 7168   ;;  %v263_v4 = vmov -1e+30   ;;  %v79_v17 = vlaneseq }
   0x4   :  { %67 = vst.msk [vmem:[#allocation2] sm:$0xff] %vm66_vm2, %v263_v4  ;;  %vm68_vm3 = vcmask 3072   ;;  %v264_v5 = vmov 0   ;;  %v265_v6 = vmov 0.0   ;;  %v76_v7 = vld [vmem:[%s328_s1] sm:$0xff] }
   0x5   :  { %69 = vst.msk [vmem:[#allocation2 + $0x8] sm:$0xf] %vm68_vm3, %v263_v4  ;;  %225 = vset.pattern.permute.xlu1 %v264_v5  ;;  %226 = vset.pattern.permute.xlu0 %v264_v5  ;;  %71 = vst.msk [vmem:[#allocation3 + $0x8] sm:$0xf] %vm68_vm3, %v265_v6  ;;  %v77_v16 = vld [vmem:[%s328_s1 + $0x8] sm:$0xf] }
   0x6   :  { %70 = vst.msk [vmem:[#allocation3] sm:$0xff] %vm66_vm2, %v265_v6  ;;  %72 = vst.msk [vmem:[#allocation4] sm:$0xff] %vm66_vm2, %v265_v6  ;;  %v80_v18 = vand.u32 127, %v79_v17  ;;  %v266_v20 = vmov 0.0025   ;;  %s267_s1 = smov [#allocation5]  }
   0x7   :  { %99 = vmax.xlane.f32.xlu0 %v98_v3  ;;  %73 = vst.msk [vmem:[#allocation4 + $0x8] sm:$0xf] %vm68_vm3, %v265_v6  ;;  %s198_s16 = sshll.u32 %s267_s1, 4  ;;  %s199_s16 = int_to_ptr.vmem [resolvable:$true] %s198_s16 }
   0x8   :  { %s239_s18 = scalar_lea.vmem %s199_s16, 128  ;;  %p244_p1 = scmp.lt.s32.totalorder %s199_s16, %s199_s16 }
   0x9   :  { %p240_p0 = scmp.ne.s32.totalorder %s199_s16, %s239_s18  ;;  %p245_p2 = scmp.lt.s32.totalorder %s239_s18, %s239_s18 }
   0xb   :  { %v101_v8 = vld [vmem:[#allocation2] sm:$0xff]  ;;  %p246_p3 = por %p245_p2, %p244_p1 }
   0xc   :  { %v102_v11 = vld [vmem:[#allocation2 + $0x8] sm:$0xf]  ;;  %v112_v48 = vld [vmem:[#allocation3 + $0x8] sm:$0xf] }
   0xd   :  { %v145_v38 = vld [vmem:[#allocation4] sm:$0xff]  ;;  %v111_v44 = vld [vmem:[#allocation3] sm:$0xff]  ;;  %p247_p4 = pnand %p246_p3, %p240_p0 }
   0xe   :  { %v146_v53 = vld [vmem:[#allocation4 + $0x8] sm:$0xf] }
  0x1d   :  { %84 = vperm.xlu0 %226, %v76_v7  }
  0x90   :  { %v96_v9 = vpop.xlane.xlu0 %95 }
  0x91   :  { %v103_v10 = vmax.f32 %v101_v8, %v96_v9 }
  0x93   :  { %v105_v12 = vsub.f32 %v101_v8, %v103_v10  ;;  %143 = vst.msk [vmem:[#allocation2] sm:$0xff] %vm66_vm2, %v103_v10  ;;  %117 = vperm.xlu1 %225, %v103_v10  }
  0x94   :  { %v100_v13 = vpop.xlane.xlu0 %99 }
  0x95   :  { %v104_v14 = vmax.f32 %v102_v11, %v100_v13  ;;  %v107_v41 = vmul.f32 1.442695, %v105_v12 }
  0x97   :  { %v106_v15 = vsub.f32 %v102_v11, %v104_v14  ;;  %144 = vst.msk [vmem:[#allocation2 + $0x8] sm:$0xf] %vm68_vm3, %v104_v14  ;;  %122 = vperm.xlu1 %225, %v104_v14  }
  0x99   :  { %v109_v42 = vmul.f32 1.442695, %v106_v15 }
  0x9a   :  { %v162_v60 = vld [vmem:[#allocation2] sm:$0xff] }
  0x9b   :  { %87 = vperm.xlu1 %225, %v77_v16  }
  0x9c   :  { %v85_v19 = vpop.permute.xlu0 %84 }
  0x9d   :  { %vm89_vm4 = vcmp.eq.s32.totalorder %v80_v18, %v85_v19 }
  0x9e   :  { %v91_v21 = vsel %vm89_vm4, 0.9025, %v266_v20 }
  0x9f   :  { %v147_v22 = vmul.f32 %v91_v21, %v74_v0 }
  0xa1   :  { %v149_v23 = vsel %vm93_vm0, %v147_v22, 0.0 }
  0xa2   :  { %150 = vadd.xlane.f32.xlu0 %v149_v23 }
 0x112   :  { %v118_v24 = vpop.permute.xlu1 %117 }
 0x113   :  { %v125_v25 = vsub.f32 %v74_v0, %v118_v24 }
 0x115   :  { %v127_v26 = vmul.f32 1.442695, %v125_v25 }
 0x116   :  { %v123_v27 = vpop.permute.xlu1 %122 }
 0x117   :  { %227 = vpow2.f32 %v127_v26  ;;  %v126_v28 = vsub.f32 %v75_v1, %v123_v27 }
 0x119   :  { %v129_v29 = vmul.f32 1.442695, %v126_v28 }
 0x11a   :  { %v88_v30 = vpop.permute.xlu1 %87 }
 0x11b   :  { %229 = vpow2.f32 %v129_v29  ;;  %vm90_vm5 = vcmp.eq.s32.totalorder %v80_v18, %v88_v30 }
 0x11c   :  { %v92_v33 = vsel %vm90_vm5, 0.9025, %v266_v20  ;;  %231 = vpow2.f32 %v107_v41 }
 0x11d   :  { %v148_v36 = vmul.f32 %v92_v33, %v75_v1  ;;  %233 = vpow2.f32 %v109_v42  ;;  %v163_v1 = vld [vmem:[#allocation2 + $0x8] sm:$0xf] }
 0x11f   :  { %v152_v37 = vsel %vm97_vm1, %v148_v36, 0.0 }
 0x121   :  { %v228_v31 = vpop.eup %227 }
 0x122   :  { %v131_v32 = vsel %vm93_vm0, %v228_v31, 0.0 }
 0x123   :  { %132 = vadd.xlane.f32.xlu1 %v131_v32 }
 0x125   :  { %v230_v34 = vpop.eup %229 }
 0x126   :  { %v134_v35 = vsel %vm97_vm1, %v230_v34, 0.0  ;;  %v232_v43 = vpop.eup %231 }
 0x127   :  { %135 = vadd.xlane.f32.xlu1 %v134_v35  ;;  %v113_v45 = vmul.f32 %v232_v43, %v111_v44  ;;  %v234_v46 = vpop.eup %233 }
 0x128   :  { %v114_v50 = vmul.f32 %v234_v46, %v112_v48 }
 0x12b   :  { %153 = vadd.xlane.f32.xlu1 %v152_v37 }
 0x12f   :  { %v151_v39 = vpop.xlane.xlu0 %150 }
 0x130   :  { %v155_v40 = vadd.f32 %v151_v39, %v145_v38 }
 0x132   :  { %157 = vst.msk [vmem:[#allocation4] sm:$0xff] %vm66_vm2, %v155_v40 }
 0x139   :  { %v172_v63 = vld [vmem:[#allocation4] sm:$0xff] }
 0x1b0   :  { %v133_v47 = vpop.xlane.xlu1 %132 }
 0x1b1   :  { %v137_v49 = vadd.f32 %v133_v47, %v113_v45 }
 0x1b3   :  { %140 = vst.msk [vmem:[#allocation3] sm:$0xff] %vm66_vm2, %v137_v49 }
 0x1b4   :  { %v136_v51 = vpop.xlane.xlu1 %135 }
 0x1b5   :  { %v138_v52 = vadd.f32 %v136_v51, %v114_v50 }
 0x1b7   :  { %142 = vst.msk [vmem:[#allocation3 + $0x8] sm:$0xf] %vm68_vm3, %v138_v52 }
 0x1b8   :  { %v154_v54 = vpop.xlane.xlu1 %153 }
 0x1b9   :  { %v156_v55 = vadd.f32 %v154_v54, %v146_v53 }
 0x1ba   :  { %v164_v56 = vld [vmem:[#allocation3] sm:$0xff] }
 0x1bb   :  { %158 = vst.msk [vmem:[#allocation4 + $0x8] sm:$0xf] %vm68_vm3, %v156_v55  ;;  %235 = vlog2.f32 %v164_v56 }
 0x1be   :  { %v165_v57 = vld [vmem:[#allocation3 + $0x8] sm:$0xf] }
 0x1bf   :  { %237 = vlog2.f32 %v165_v57 }
 0x1c2   :  { %v173_v4 = vld [vmem:[#allocation4 + $0x8] sm:$0xf] }
 0x1c5   :  { %v236_v58 = vpop.eup %235 }
 0x1c6   :  { %v167_v59 = vmul.f32 0.6931472, %v236_v58 }
 0x1c8   :  { %v170_v61 = vadd.f32 %v167_v59, %v162_v60 }
 0x1c9   :  { %v238_v62 = vpop.eup %237 }
 0x1ca   :  { %v169_v0 = vmul.f32 0.6931472, %v238_v62  ;;  %v174_v3 = vsub.f32 %v170_v61, %v172_v63 }
 0x1cc   :  { %v171_v2 = vadd.f32 %v169_v0, %v163_v1  ;;  %v177_v6 = vsel %vm66_vm2, %v174_v3, 0.0 }
 0x1ce   :  { %v175_v5 = vsub.f32 %v171_v2, %v173_v4 }
 0x1d0   :  { %v178_v7 = vsel %vm68_vm3, %v175_v5, 0.0 }
 0x1d1   :  { %v179_v8 = vadd.f32 %v178_v7, %v177_v6 }
 0x1d3   :  { %180 = vadd.xlane.f32.xlu1 %v179_v8 }
 0x260   :  { %v181_v9 = vpop.xlane.xlu1 %180 }
 0x261   :  { %v182_v10 = vrot.slane %v181_v9, 4 }
 0x263   :  { %v183_v11 = vadd.f32 %v182_v10, %v181_v9 }
 0x265   :  { %v184_v12 = vrot.slane %v183_v11, 2 }
 0x267   :  { %v185_v13 = vadd.f32 %v184_v12, %v183_v11 }
 0x269   :  { %v186_v14 = vrot.slane %v185_v13, 1 }
 0x26b   :  { %v187_v15 = vadd.f32 %v186_v14, %v185_v13 }
 0x26d   :  { %218 = vpush %v187_v15 }
 0x29e   :  { %s219_s17 = spop %218 }
 0x29f   :  { %v189_v16 = vstv %s219_s17 }
 0x2a0   :  { %191 = vst [vmem:[#allocation5] sm:$0xff] %v189_v16 }
 0x2a1   :  { %250 = shalt.err (!%p247_p4)
}
 0x2a2   :  { %s251_s21 = scalar_lea.hbm %s329_s2, 128 }
 0x2a3   :  { %p252_p5 = scmp.ne.s32.totalorder %s329_s2, %s251_s21  ;;  %p255_p6 = scmp.lt.u32.totalorder %s251_s21, %s329_s2 }
 0x2a5   :  { %p257_p7 = pnand %p255_p6, %p252_p5 }
 0x2a7   :  { %260 = shalt.err (!%p257_p7)
}
 0x2a8   :  { %201 = dma.vmem_to_hbm [thread:$0]  %s199_s16, 128, %s329_s2, [#allocation6]  }
 0x2a9   :  { %261 = dma.done.wait [#allocation6], 128  }
 0x2aa   :  { %262 = vsyncadd [#allocation6], 4294967168 }
 0x2ab   :  { %205 = vsyncpa [#allocation6], 1 }

</bundles_post_ra>
